<compile_context>
chip_gen: v5e
topology: v5e:2x2
jax: 0.10.0
libtpu: 0.0.40
codegen_flags: <defaults>
</compile_context>

<pallas_src>
import functools

import jax
import jax.numpy as jnp
import numpy as np
from jax.experimental import pallas as pl
from jax.experimental.pallas import tpu as pltpu


_NEG_BIG = -1e30          # finite "-inf" so masked lanes never produce NaN
_MAX_C_CHUNK = 2048       # column chunk (multiple of 128) for vocab-scale C


# ----------------------------------------------------------------------------
# tile / VMEM sizing helpers
# ----------------------------------------------------------------------------

def _vmem_budget():
    """(per-buffer logits tile target bytes, scoped vmem limit bytes)."""
    try:
        info = pltpu.get_tpu_info()
        cap = getattr(info, "vmem_capacity_bytes", None)
        if cap is not None and cap >= 100 * 1024 * 1024:      # v5e / v6e: 128 MiB
            return 4 * 1024 * 1024, 64 * 1024 * 1024
    except Exception:
        pass
    # v7x (64 MiB physical) or unknown: stay conservative.
    return 2 * 1024 * 1024, 32 * 1024 * 1024


def _floor_pow2(n: int) -> int:
    p = 1
    while p * 2 <= n:
        p *= 2
    return p


def _choose_row_tile(b: int, tc: int, itemsize: int, budget_bytes: int) -> int:
    rows_by_bytes = max(8, budget_bytes // max(1, tc * itemsize))
    tb = min(_floor_pow2(rows_by_bytes), 1024)
    # keep >= 2 row blocks so both v7x TensorCores get work (when B allows)
    tb = min(tb, max(8, pl.next_power_of_2(pl.cdiv(b, 2))))
    return max(8, int(tb))


def _choose_batch_tile(b: int) -> int:
    return int(min(256, max(8, pl.next_power_of_2(pl.cdiv(b, 2)))))


# ----------------------------------------------------------------------------
# Part 1: masked, class-weighted cross entropy (reduction='mean')
# ----------------------------------------------------------------------------

def _masked_ce_kernel(x_ref, side_ref, part_ref, m_scr, l_scr, t_scr,
                      *, total_rows, total_cols):
    """Grid = (row_blocks, col_blocks).  Online logsumexp over the C axis.

    x_ref   : (TB, TC) logits block, native dtype (bf16/f32).
    side_ref: (TB, 2) f32 -- col 0 = target (as f32), col 1 = weight[target]*mask.
    part_ref: (1, 8, 128) f32 lane-dense partials (sublane 0 = num, 1 = den).
    m_scr/l_scr/t_scr : (TB, 1) f32 running max / running sum / target logit.
    """
    i = pl.program_id(0)
    kc = pl.program_id(1)
    tb, tc = x_ref.shape

    @pl.when(kc == 0)
    def _():
        m_scr[...] = jnp.full_like(m_scr, _NEG_BIG)
        l_scr[...] = jnp.zeros_like(l_scr)
        t_scr[...] = jnp.zeros_like(t_scr)

    x = x_ref[...].astype(jnp.float32)

    # Ragged ROW tail (no wrapper pad): garbage rows -> 0 BEFORE exp/logsumexp.
    row_ids = i * tb + jax.lax.broadcasted_iota(jnp.int32, (tb, 1), 0)
    row_valid = row_ids < total_rows
    x = jnp.where(row_valid, x, 0.0)

    # Ragged COLUMN tail: out-of-range classes -> large negative (excluded).
    col_ids = kc * tc + jax.lax.broadcasted_iota(jnp.int32, (tb, tc), 1)
    x = jnp.where(col_ids < total_cols, x, _NEG_BIG)

    side = side_ref[...]
    t = side[:, 0:1].astype(jnp.int32)
    mw = jnp.where(row_valid, side[:, 1:2], 0.0)

    # online logsumexp update
    m_prev = m_scr[...]
    m_new = jnp.maximum(m_prev, jnp.max(x, axis=-1, keepdims=True))
    alpha = jnp.exp(m_prev - m_new)
    l_scr[...] = alpha * l_scr[...] + jnp.sum(jnp.exp(x - m_new),
                                              axis=-1, keepdims=True)
    m_scr[...] = m_new

    # gather x[i, t_i] via cmp+select (no materialized one-hot); only the
    # column block containing the target contributes.
    t_scr[...] += jnp.sum(jnp.where(col_ids == t, x, 0.0),
                          axis=-1, keepdims=True)

    @pl.when(kc == pl.num_programs(1) - 1)
    def _():
        lse = jnp.log(l_scr[...]) + m_scr[...]
        num = jnp.sum(mw * (lse - t_scr[...]))
        den = jnp.sum(mw)
        sub = jax.lax.broadcasted_iota(jnp.int32, part_ref.shape, 1)
        part_ref[...] = jnp.where(sub == 0, num, jnp.where(sub == 1, den, 0.0))


def masked_cross_entropy_loss(logits, target, mask, weight):
    """Equivalent of:
         t = target.masked_select(mask)
         x = input.masked_select(mask.view(-1, 1)).view(-1, C)
         F.cross_entropy(x, t, weight=weight, reduction='mean')
       computed without dynamic shapes by zero-weighting masked-out rows.
       NOTE: an all-zero mask (or all-zero selected weights) yields NaN (0/0).
    """
    b, c = logits.shape
    x = jnp.asarray(logits)                                  # native dtype pass-through
    t = jnp.asarray(target, jnp.int32).reshape(b)
    w = jnp.asarray(weight, jnp.float32)
    m = jnp.asarray(mask).astype(jnp.float32).reshape(b)
    mw = (w[t] * m).reshape(b, 1)                            # weight[target] * mask
    # one packed lane-sparse side stream instead of two
    side = jnp.concatenate([t.astype(jnp.float32).reshape(b, 1), mw], axis=1)

    tile_budget, vmem_limit = _vmem_budget()
    tc = c if c <= _MAX_C_CHUNK else _MAX_C_CHUNK            # multiple of 128 when chunked
    tb = _choose_row_tile(b, tc, x.dtype.itemsize, tile_budget)
    nb = pl.cdiv(b, tb)
    nc = pl.cdiv(c, tc)

    kernel = functools.partial(_masked_ce_kernel, total_rows=b, total_cols=c)
    partials = pl.pallas_call(
        kernel,
        out_shape=jax.ShapeDtypeStruct((nb, 8, 128), jnp.float32),
        grid=(nb, nc),
        in_specs=[
            pl.BlockSpec((tb, tc), lambda i, k: (i, k)),
            pl.BlockSpec((tb, 2), lambda i, k: (i, 0)),
        ],
        out_specs=pl.BlockSpec((1, 8, 128), lambda i, k: (i, 0, 0)),
        scratch_shapes=[
            pltpu.VMEM((tb, 1), jnp.float32),   # running max
            pltpu.VMEM((tb, 1), jnp.float32),   # running sum
            pltpu.VMEM((tb, 1), jnp.float32),   # running target logit
        ],
        compiler_params=pltpu.CompilerParams(
            dimension_semantics=("parallel", "arbitrary"),
            vmem_limit_bytes=int(vmem_limit),
        ),
    )(x, side)

    num = jnp.sum(partials[:, 0, 0])
    den = jnp.sum(partials[:, 1, 0])
    return num / den


def _ce_reference(logits, target, mask, weight):
    x = jnp.asarray(logits).astype(jnp.float32)
    logp = jax.nn.log_softmax(x, axis=-1)
    nll = -jnp.take_along_axis(logp, target[:, None].astype(jnp.int32), axis=-1)[:, 0]
    w_t = jnp.asarray(weight, jnp.float32)[target]
    m = jnp.asarray(mask).astype(jnp.float32)
    return jnp.sum(w_t * nll * m) / jnp.sum(w_t * m)


# ----------------------------------------------------------------------------
# Part 2: CLR forward -- fused projection head (Linear -> ReLU -> Linear)
# ----------------------------------------------------------------------------

def _projection_head_kernel(e_ref, w1_ref, b1_ref, w2_ref, b2_ref, p_ref):
    e = e_ref[...]                                              # bf16 operands
    h = jnp.dot(e, w1_ref[...], preferred_element_type=jnp.float32) + b1_ref[...]
    h = jnp.maximum(h, 0.0).astype(e.dtype)                     # back to bf16 for MXU
    p = jnp.dot(h, w2_ref[...], preferred_element_type=jnp.float32) + b2_ref[...]
    p_ref[...] = p.astype(p_ref.dtype)


def clr_forward(embedding, w1, b1, w2, b2, *, compute_dtype=jnp.bfloat16):
    """CLR.forward: returns (embedding, projection).

    The backbone embedding is taken as input (see TODO at top of file); the
    projection head runs on the MXU in bf16 with f32 accumulation, gridded
    over the batch dimension with VMEM-resident weights.
    """
    b, d_in = embedding.shape
    d_hid = w1.shape[1]
    d_out = w2.shape[1]

    e = embedding.astype(compute_dtype)
    w1c = jnp.asarray(w1).astype(compute_dtype)
    w2c = jnp.asarray(w2).astype(compute_dtype)
    b1c = jnp.asarray(b1, jnp.float32).reshape(1, d_hid)
    b2c = jnp.asarray(b2, jnp.float32).reshape(1, d_out)

    tm = _choose_batch_tile(b)
    nm = pl.cdiv(b, tm)
    _, vmem_limit = _vmem_budget()

    projection = pl.pallas_call(
        _projection_head_kernel,
        out_shape=jax.ShapeDtypeStruct((b, d_out), embedding.dtype),
        grid=(nm,),
        in_specs=[
            pl.BlockSpec((tm, d_in), lambda i: (i, 0)),       # streamed activations
            pl.BlockSpec((d_in, d_hid), lambda i: (0, 0)),    # resident weights
            pl.BlockSpec((1, d_hid), lambda i: (0, 0)),
            pl.BlockSpec((d_hid, d_out), lambda i: (0, 0)),
            pl.BlockSpec((1, d_out), lambda i: (0, 0)),
        ],
        out_specs=pl.BlockSpec((tm, d_out), lambda i: (i, 0)),
        compiler_params=pltpu.CompilerParams(
            dimension_semantics=("parallel",),
            vmem_limit_bytes=int(vmem_limit),
        ),
    )(e, w1c, b1c, w2c, b2c)
    return embedding, projection


# ----------------------------------------------------------------------------
if __name__ == "__main__":
    key = jax.random.PRNGKey(0)
    k1, k2, k3, k4, k5, k6, k7, k8, k9 = jax.random.split(key, 9)

    # --- masked cross entropy (bf16 logits, ragged batch handled in-kernel) ---
    B, C = 16, 8
    logits = jax.random.normal(k1, (B, C), dtype=jnp.bfloat16)
    target = jax.random.randint(k2, (B,), 0, C, dtype=jnp.int32)
    mask = jax.random.bernoulli(k3, p=0.6, shape=(B,))
    mask = mask.at[0].set(True)                       # guarantee non-empty mask
    weight = jax.random.uniform(k4, (C,), jnp.float32, 0.5, 1.5)

    loss = jax.block_until_ready(jax.jit(masked_cross_entropy_loss)(
        logits, target, mask, weight))
    ref = jax.block_until_ready(_ce_reference(logits, target, mask, weight))
    np.testing.assert_allclose(np.asarray(loss), np.asarray(ref),
                               rtol=1e-3, atol=1e-3)

    # --- CLR forward (projection head, bf16 MXU path, batch-gridded) ---
    Bc, Din, Dhid, Dout = 16, 256, 256, 256
    emb = jax.random.normal(k5, (Bc, Din), dtype=jnp.float32)
    w1 = jax.random.normal(k6, (Din, Dhid), jnp.float32) / np.sqrt(Din)
    b1 = jax.random.normal(k7, (Dhid,), jnp.float32) * 0.1
    w2 = jax.random.normal(k8, (Dhid, Dout), jnp.float32) / np.sqrt(Dhid)
    b2 = jax.random.normal(k9, (Dout,), jnp.float32) * 0.1

    emb_out, proj = jax.jit(clr_forward)(emb, w1, b1, w2, b2)
    proj = jax.block_until_ready(proj)

    # reference with the same bf16 operand rounding / f32 accumulation
    e_bf, w1_bf, w2_bf = (emb.astype(jnp.bfloat16), w1.astype(jnp.bfloat16),
                          w2.astype(jnp.bfloat16))
    h_ref = jnp.maximum(
        jnp.dot(e_bf, w1_bf, preferred_element_type=jnp.float32) + b1, 0.0
    ).astype(jnp.bfloat16)
    proj_ref = jnp.dot(h_ref, w2_bf, preferred_element_type=jnp.float32) + b2
    np.testing.assert_allclose(np.asarray(proj), np.asarray(proj_ref),
                               rtol=2e-2, atol=2e-2)
    np.testing.assert_allclose(np.asarray(emb_out), np.asarray(emb))

    print("KERNEL_OK")
</pallas_src>

<mosaic_0001>
module attributes {stable_mosaic.version = 11 : i64} {
  func.func @_masked_ce_kernel(%arg0: i32, %arg1: i32, %arg2: memref<8x8xbf16, #tpu.memory_space<vmem>>, %arg3: memref<8x2xf32, #tpu.memory_space<vmem>>, %arg4: memref<1x8x128xf32, #tpu.memory_space<vmem>>, %arg5: memref<8x1xf32, #tpu.memory_space<vmem>>, %arg6: memref<8x1xf32, #tpu.memory_space<vmem>>, %arg7: memref<8x1xf32, #tpu.memory_space<vmem>>) attributes {dimension_semantics = [#tpu.dimension_semantics<parallel>, #tpu.dimension_semantics<arbitrary>], iteration_bounds = array<i64: 2, 1>, scalar_prefetch = 0 : i64, scratch_operands = 3 : i64, tpu.core_type = #tpu.core_type<tc>, window_params = [{transform_indices = @transform_0, window_bounds = array<i64: 8, 8>}, {transform_indices = @transform_1, window_bounds = array<i64: 8, 2>}, {transform_indices = @transform_2, window_bounds = array<i64: 1, 8, 128>}]} {
    %c0_i32 = arith.constant 0 : i32
    %0 = arith.cmpi eq, %arg1, %c0_i32 : i32
    %1 = arith.extui %0 : i1 to i32
    %c0_i32_0 = arith.constant 0 : i32
    %2 = arith.cmpi ne, %1, %c0_i32_0 : i32
    scf.if %2 {
      %cst_26 = arith.constant -1.000000e+30 : f32
      %57 = vector.broadcast %cst_26 : f32 to vector<8x1xf32>
      %c0_27 = arith.constant 0 : index
      %c0_28 = arith.constant 0 : index
      %58 = vector.load %arg5[%c0_27, %c0_28] : memref<8x1xf32, #tpu.memory_space<vmem>>, vector<8x1xf32>
      tpu.vector_store %arg5[%c0_27, %c0_28], %57 {strides = array<i32>} : memref<8x1xf32, #tpu.memory_space<vmem>>, vector<8x1xf32>,
      %cst_29 = arith.constant 0.000000e+00 : f32
      %59 = vector.broadcast %cst_29 : f32 to vector<8x1xf32>
      %c0_30 = arith.constant 0 : index
      %c0_31 = arith.constant 0 : index
      %60 = vector.load %arg6[%c0_30, %c0_31] : memref<8x1xf32, #tpu.memory_space<vmem>>, vector<8x1xf32>
      tpu.vector_store %arg6[%c0_30, %c0_31], %59 {strides = array<i32>} : memref<8x1xf32, #tpu.memory_space<vmem>>, vector<8x1xf32>,
      %cst_32 = arith.constant 0.000000e+00 : f32
      %61 = vector.broadcast %cst_32 : f32 to vector<8x1xf32>
      %c0_33 = arith.constant 0 : index
      %c0_34 = arith.constant 0 : index
      %62 = vector.load %arg7[%c0_33, %c0_34] : memref<8x1xf32, #tpu.memory_space<vmem>>, vector<8x1xf32>
      tpu.vector_store %arg7[%c0_33, %c0_34], %61 {strides = array<i32>} : memref<8x1xf32, #tpu.memory_space<vmem>>, vector<8x1xf32>,
    } else {
    }
    %c0 = arith.constant 0 : index
    %c0_1 = arith.constant 0 : index
    %3 = vector.load %arg2[%c0, %c0_1] : memref<8x8xbf16, #tpu.memory_space<vmem>>, vector<8x8xbf16>
    %4 = arith.extf %3 : vector<8x8xbf16> to vector<8x8xf32>
    %c8_i32 = arith.constant 8 : i32
    %5 = arith.muli %arg0, %c8_i32 : i32
    %6 = tpu.iota {dimensions = array<i32: 0>} : vector<8x1xi32>
    %7 = vector.broadcast %5 : i32 to vector<8x1xi32>
    %8 = arith.addi %7, %6 : vector<8x1xi32>
    %c16_i32 = arith.constant 16 : i32
    %9 = vector.broadcast %c16_i32 : i32 to vector<8x1xi32>
    %10 = arith.cmpi slt, %8, %9 : vector<8x1xi32>
    %cst = arith.constant 0.000000e+00 : f32
    %11 = vector.shape_cast %10 : vector<8x1xi1> to vector<8x1xi1>
    %12 = vector.broadcast %11 : vector<8x1xi1> to vector<8x8xi1>
    %13 = vector.broadcast %cst : f32 to vector<8x8xf32>
    %14 = arith.select %12, %4, %13 : vector<8x8xi1>, vector<8x8xf32>
    %c8_i32_2 = arith.constant 8 : i32
    %15 = arith.muli %arg1, %c8_i32_2 : i32
    %16 = tpu.iota {dimensions = array<i32: 1>} : vector<8x8xi32>
    %17 = vector.broadcast %15 : i32 to vector<8x8xi32>
    %18 = arith.addi %17, %16 : vector<8x8xi32>
    %c8_i32_3 = arith.constant 8 : i32
    %19 = vector.broadcast %c8_i32_3 : i32 to vector<8x8xi32>
    %20 = arith.cmpi slt, %18, %19 : vector<8x8xi32>
    %cst_4 = arith.constant -1.000000e+30 : f32
    %21 = vector.broadcast %cst_4 : f32 to vector<8x8xf32>
    %22 = arith.select %20, %14, %21 : vector<8x8xi1>, vector<8x8xf32>
    %c0_5 = arith.constant 0 : index
    %c0_6 = arith.constant 0 : index
    %23 = vector.load %arg3[%c0_5, %c0_6] : memref<8x2xf32, #tpu.memory_space<vmem>>, vector<8x2xf32>
    %24 = vector.extract_strided_slice %23 {offsets = [0, 0], sizes = [8, 1], strides = [1, 1]} : vector<8x2xf32> to vector<8x1xf32>
    %25 = arith.fptosi %24 : vector<8x1xf32> to vector<8x1xi32>
    %26 = vector.extract_strided_slice %23 {offsets = [0, 1], sizes = [8, 1], strides = [1, 1]} : vector<8x2xf32> to vector<8x1xf32>
    %cst_7 = arith.constant 0.000000e+00 : f32
    %27 = vector.broadcast %cst_7 : f32 to vector<8x1xf32>
    %28 = arith.select %10, %26, %27 : vector<8x1xi1>, vector<8x1xf32>
    %c0_8 = arith.constant 0 : index
    %c0_9 = arith.constant 0 : index
    %29 = vector.load %arg5[%c0_8, %c0_9] : memref<8x1xf32, #tpu.memory_space<vmem>>, vector<8x1xf32>
    %cst_10 = arith.constant dense<0xFF800000> : vector<8xf32>
    %30 = vector.multi_reduction <maximumf>, %22, %cst_10 [1] : vector<8x8xf32> to vector<8xf32>
    %31 = vector.shape_cast %30 : vector<8xf32> to vector<8x1xf32>
    %32 = arith.maximumf %29, %31 : vector<8x1xf32>
    %33 = arith.subf %29, %32 : vector<8x1xf32>
    %34 = math.exp %33 : vector<8x1xf32>
    %c0_11 = arith.constant 0 : index
    %c0_12 = arith.constant 0 : index
    %35 = vector.load %arg6[%c0_11, %c0_12] : memref<8x1xf32, #tpu.memory_space<vmem>>, vector<8x1xf32>
    %36 = arith.mulf %34, %35 : vector<8x1xf32>
    %37 = vector.broadcast %32 : vector<8x1xf32> to vector<8x8xf32>
    %38 = arith.subf %22, %37 : vector<8x8xf32>
    %39 = math.exp %38 : vector<8x8xf32>
    %cst_13 = arith.constant dense<0.000000e+00> : vector<8xf32>
    %40 = vector.multi_reduction <add>, %39, %cst_13 [1] : vector<8x8xf32> to vector<8xf32>
    %41 = vector.shape_cast %40 : vector<8xf32> to vector<8x1xf32>
    %42 = arith.addf %36, %41 : vector<8x1xf32>
    %c0_14 = arith.constant 0 : index
    %c0_15 = arith.constant 0 : index
    %43 = vector.load %arg6[%c0_14, %c0_15] : memref<8x1xf32, #tpu.memory_space<vmem>>, vector<8x1xf32>
    tpu.vector_store %arg6[%c0_14, %c0_15], %42 {strides = array<i32>} : memref<8x1xf32, #tpu.memory_space<vmem>>, vector<8x1xf32>,
    %c0_16 = arith.constant 0 : index
    %c0_17 = arith.constant 0 : index
    %44 = vector.load %arg5[%c0_16, %c0_17] : memref<8x1xf32, #tpu.memory_space<vmem>>, vector<8x1xf32>
    tpu.vector_store %arg5[%c0_16, %c0_17], %32 {strides = array<i32>} : memref<8x1xf32, #tpu.memory_space<vmem>>, vector<8x1xf32>,
    %c0_18 = arith.constant 0 : index
    %c0_19 = arith.constant 0 : index
    %45 = vector.load %arg7[%c0_18, %c0_19] : memref<8x1xf32, #tpu.memory_space<vmem>>, vector<8x1xf32>
    %46 = vector.broadcast %25 : vector<8x1xi32> to vector<8x8xi32>
    %47 = arith.cmpi eq, %18, %46 : vector<8x8xi32>
    %cst_20 = arith.constant 0.000000e+00 : f32
    %48 = vector.broadcast %cst_20 : f32 to vector<8x8xf32>
    %49 = arith.select %47, %22, %48 : vector<8x8xi1>, vector<8x8xf32>
    %cst_21 = arith.constant dense<0.000000e+00> : vector<8xf32>
    %50 = vector.multi_reduction <add>, %49, %cst_21 [1] : vector<8x8xf32> to vector<8xf32>
    %51 = vector.shape_cast %50 : vector<8xf32> to vector<8x1xf32>
    %52 = arith.addf %45, %51 : vector<8x1xf32>
    %c0_22 = arith.constant 0 : index
    %c0_23 = arith.constant 0 : index
    %53 = vector.load %arg7[%c0_22, %c0_23] : memref<8x1xf32, #tpu.memory_space<vmem>>, vector<8x1xf32>
    tpu.vector_store %arg7[%c0_22, %c0_23], %52 {strides = array<i32>} : memref<8x1xf32, #tpu.memory_space<vmem>>, vector<8x1xf32>,
    %c0_i32_24 = arith.constant 0 : i32
    %54 = arith.cmpi eq, %arg1, %c0_i32_24 : i32
    %55 = arith.extui %54 : i1 to i32
    %c0_i32_25 = arith.constant 0 : i32
    %56 = arith.cmpi ne, %55, %c0_i32_25 : i32
    scf.if %56 {
      %c0_26 = arith.constant 0 : index
      %c0_27 = arith.constant 0 : index
      %57 = vector.load %arg6[%c0_26, %c0_27] : memref<8x1xf32, #tpu.memory_space<vmem>>, vector<8x1xf32>
      %58 = math.log %57 : vector<8x1xf32>
      %c0_28 = arith.constant 0 : index
      %c0_29 = arith.constant 0 : index
      %59 = vector.load %arg5[%c0_28, %c0_29] : memref<8x1xf32, #tpu.memory_space<vmem>>, vector<8x1xf32>
      %60 = arith.addf %58, %59 : vector<8x1xf32>
      %c0_30 = arith.constant 0 : index
      %c0_31 = arith.constant 0 : index
      %61 = vector.load %arg7[%c0_30, %c0_31] : memref<8x1xf32, #tpu.memory_space<vmem>>, vector<8x1xf32>
      %62 = arith.subf %60, %61 : vector<8x1xf32>
      %63 = arith.mulf %28, %62 : vector<8x1xf32>
      %64 = vector.shape_cast %63 : vector<8x1xf32> to vector<1x8x1xf32>
      %cst_32 = arith.constant dense<0.000000e+00> : vector<1xf32>
      %65 = vector.multi_reduction <add>, %64, %cst_32 [1, 2] : vector<1x8x1xf32> to vector<1xf32>
      %66 = vector.shape_cast %65 : vector<1xf32> to vector<1x1x1xf32>
      %67 = vector.extract %66[0, 0, 0] : f32 from vector<1x1x1xf32>
      %68 = vector.shape_cast %28 : vector<8x1xf32> to vector<1x8x1xf32>
      %cst_33 = arith.constant dense<0.000000e+00> : vector<1xf32>
      %69 = vector.multi_reduction <add>, %68, %cst_33 [1, 2] : vector<1x8x1xf32> to vector<1xf32>
      %70 = vector.shape_cast %69 : vector<1xf32> to vector<1x1x1xf32>
      %71 = vector.extract %70[0, 0, 0] : f32 from vector<1x1x1xf32>
      %72 = tpu.iota {dimensions = array<i32: 1>} : vector<1x8x128xi32>
      %c0_i32_34 = arith.constant 0 : i32
      %73 = vector.broadcast %c0_i32_34 : i32 to vector<1x8x128xi32>
      %74 = arith.cmpi eq, %72, %73 : vector<1x8x128xi32>
      %c1_i32 = arith.constant 1 : i32
      %75 = vector.broadcast %c1_i32 : i32 to vector<1x8x128xi32>
      %76 = arith.cmpi eq, %72, %75 : vector<1x8x128xi32>
      %cst_35 = arith.constant 0.000000e+00 : f32
      %77 = vector.broadcast %71 : f32 to vector<1x8x128xf32>
      %78 = vector.broadcast %cst_35 : f32 to vector<1x8x128xf32>
      %79 = arith.select %76, %77, %78 : vector<1x8x128xi1>, vector<1x8x128xf32>
      %80 = vector.broadcast %67 : f32 to vector<1x8x128xf32>
      %81 = arith.select %74, %80, %79 : vector<1x8x128xi1>, vector<1x8x128xf32>
      %c0_36 = arith.constant 0 : index
      %c0_37 = arith.constant 0 : index
      %c0_38 = arith.constant 0 : index
      %82 = vector.load %arg4[%c0_36, %c0_37, %c0_38] : memref<1x8x128xf32, #tpu.memory_space<vmem>>, vector<1x8x128xf32>
      tpu.vector_store %arg4[%c0_36, %c0_37, %c0_38], %81 {strides = array<i32>} : memref<1x8x128xf32, #tpu.memory_space<vmem>>, vector<1x8x128xf32>,
    } else {
    }
    return
  }
  func.func @transform_0(%arg0: i32, %arg1: i32) -> (i32, i32) {
    %c0_i32 = arith.constant 0 : i32
    return %arg0, %arg1 : i32, i32
  }
  func.func @transform_1(%arg0: i32, %arg1: i32) -> (i32, i32) {
    %c0_i32 = arith.constant 0 : i32
    %c0_i32_0 = arith.constant 0 : i32
    return %arg0, %c0_i32 : i32, i32
  }
  func.func @transform_2(%arg0: i32, %arg1: i32) -> (i32, i32, i32) {
    %c0_i32 = arith.constant 0 : i32
    %c0_i32_0 = arith.constant 0 : i32
    %c0_i32_1 = arith.constant 0 : i32
    return %arg0, %c0_i32, %c0_i32_0 : i32, i32, i32
  }
}

</mosaic_0001>

<bundles_post_ra>
// kernel: masked_cross_entropy_loss.1
= control target key start
LH: loop header
LB: loop body
LE: loop exit
PB: predicated region body
PF: predicated region fallthrough
CT: control target
= control target key end

     0   :  { %s472_s9 = smov 0   ;;  %s474_s10 = smov 0   ;;  %s539_s0 = inlined_call_operand.vmem [shape: bf16[16,8], index: 0, kind: input, shape index: {}]   ;;  %s540_s1 = inlined_call_operand.vmem [shape: f32[16,2], index: 1, kind: input, shape index: {}]   ;;  %s541_s2 = inlined_call_operand.vmem [shape: f32[2,8,128], index: 2, kind: output, shape index: {}]  }
   0x1   :  { %s476_s11 = smov 0  }
   0x2 LB: > { %s24_s12 = sadd.s32 1, %s446_s10  ;;  %p375_p0 = scmp.ge.s32.totalorder %s450_s11, 1  ;;  %s450_s11 = sphi %s476_s11, %s12_s11   ;;  %s446_s10 = sphi %s474_s10, %s543_s10   ;;  %s442_s9 = sphi %s472_s9, %s542_s9  }
   0x3   : > { %p26_p1 = scmp.ge.s32.totalorder %s24_s12, 2  ;;  %p137_p2 = scmp.lt.s32.totalorder %s450_s11, 3 }
   0x5   : > { %s545_s12 = smov (%p26_p1, %s24_s12), 0  ;;  %p138_p3 = pnand %p375_p0, %p137_p2 }
   0x6   : > { %p164_p4 = scmp.lt.s32.totalorder (!%p138_p3), %s442_s9, 1  ;;  %s379_s13 = sshll.u32 (!%p138_p3), %s442_s9, 3 }
   0x7   : > { %141 = sbr.rel (%p138_p3) target bundleno = 781 (0x30d), region = 28  ;;  %s455_s22 = smov (!%p138_p3), 1  }
   0x8   : > { %s456_s23 = smov (!%p138_p3), 127  }
   0xc   : > { %v190_v0 = vlaneseq  ;;  %vm183_vm0 = vcmask 7168   ;;  %v192_v1 = vstv %s379_s13  ;;  %v452_v2 = vmov -1e+30   ;;  %s547_s9 = smov (!%p164_p4, %s442_s9), 1 }
   0xd   : > { %184 = vst.msk [vmem:[#allocation2] sm:$0xff] %vm183_vm0, %v452_v2  ;;  %s376_s14 = sshll.u32 %s547_s9, 2  ;;  %vm209_vm3 = vcmask 64512   ;;  %s377_s18 = sshll.u32 %s547_s9, 3  ;;  %v453_v11 = vmov 0   ;;  %v454_v12 = vmov 0.0  }
   0xe   : > { %v493_v3 = vshrl.u32 %v190_v0, 7  ;;  %v200_v4 = vand.u32 127, %v190_v0  ;;  %s170_s17 = scalar_lea.vmem %s539_s0, %s376_s14  ;;  %420 = vset.pattern.permute.xlu0 %v453_v11  ;;  %421 = vset.pattern.permute.xlu1 %v453_v11  ;;  %s174_s21 = scalar_lea.vmem %s540_s1, %s377_s18  ;;  %185 = vst.msk [vmem:[#allocation3] sm:$0xff] %vm183_vm0, %v454_v12 }
   0xf   : > { %v187_v6 = vld [vmem:[%s170_s17] sm:$0xf]  ;;  %186 = vst.msk [vmem:[#allocation4] sm:$0xff] %vm183_vm0, %v454_v12  ;;  %s178_s28 = scalar_lea.vmem %s541_s2, %s377_s18 }
  0x10   : > { %v497_v5 = vadd.s32 %v192_v1, %v493_v3  ;;  %v188_v7 = vunpack.c.l.bf16 %v187_v6  ;;  %vm203_vm2 = vcmp.lt.s32.totalorder %v200_v4, 8  ;;  %v205_v13 = vld [vmem:[%s174_s21] sm:$0xff]  ;;  %vm289_vm6 = vcmp.eq.s32.totalorder %v493_v3, 1 }
  0x11   : > { %vm382_vm4 = vcmp.lt.s32.totalorder %v205_v13, 0  ;;  %v383_v14 = vceil.f32 %v205_v13  ;;  %v384_v15 = vfloor.f32 %v205_v13  ;;  %vm288_vm7 = vcmp.eq.s32.totalorder %v493_v3, 0 }
  0x12   : > { %vm194_vm1 = vcmp.lt.s32.totalorder %v497_v5, 16 }
  0x13   : > { %v197_v8 = vsel %vm194_vm1, %v188_v7, 0.0  ;;  %v385_v16 = vsel %vm382_vm4, %v383_v14, %v384_v15  ;;  %v207_v46 = vsel %vm194_vm1, %v205_v13, 0.0 }
  0x14   : > { %v204_v9 = vsel %vm203_vm2, %v197_v8, -1e+30  ;;  %v386_v17 = vcvt.f32.s32 %v385_v16  ;;  %v208_v18 = vld [vmem:[#allocation2] sm:$0xff] }
  0x15   : > { %v210_v10 = vsel %vm209_vm3, %v204_v9, -inf  ;;  %v217_v35 = vld [vmem:[#allocation3] sm:$0xff] }
  0x16   : > { %211 = vmax.xlane.f32.xlu0 %v210_v10  ;;  %236 = vperm.xlu1 %421, %v386_v17   ;;  %v234_v30 = vld [vmem:[#allocation4] sm:$0xff] }
  0x88   : > { %v237_v22 = vpop.permute.xlu1 %236 }
  0x89   : > { %v212_v19 = vpop.xlane.xlu0 %211  ;;  %vm238_vm5 = vcmp.eq.s32.totalorder %v200_v4, %v237_v22 }
  0x8a   : > { %v213_v20 = vmax.f32 %v208_v18, %v212_v19  ;;  %v239_v23 = vsel %vm238_vm5, %v204_v9, 0.0 }
  0x8b   : > { %v240_v24 = vsel %vm209_vm3, %v239_v23, 0.0 }
  0x8c   : > { %v214_v21 = vsub.f32 %v208_v18, %v213_v20  ;;  %233 = vst.msk [vmem:[#allocation2] sm:$0xff] %vm183_vm0, %v213_v20  ;;  %221 = vperm.xlu0 %420, %v213_v20   ;;  %241 = vadd.xlane.f32.xlu2 %v240_v24 }
  0x8e   : > { %v215_v33 = vmul.f32 1.442695, %v214_v21 }
  0x93   : > { %v251_v42 = vld [vmem:[#allocation2] sm:$0xff] }
  0xfe   : > { %v222_v25 = vpop.permute.xlu0 %221 }
  0xff   : > { %v224_v26 = vsub.f32 %v204_v9, %v222_v25  ;;  %v242_v31 = vpop.xlane.xlu2 %241 }
 0x100   : > { %v243_v32 = vadd.f32 %v242_v31, %v234_v30 }
 0x101   : > { %v225_v27 = vmul.f32 1.442695, %v224_v26 }
 0x102   : > { %244 = vst.msk [vmem:[#allocation4] sm:$0xff] %vm183_vm0, %v243_v32 }
 0x103   : > { %422 = vpow2.f32 %v225_v27 }
 0x104   : > { %424 = vpow2.f32 %v215_v33 }
 0x109   : > { %v423_v28 = vpop.eup %422  ;;  %v253_v43 = vld [vmem:[#allocation4] sm:$0xff] }
 0x10a   : > { %v227_v29 = vsel %vm209_vm3, %v423_v28, 0.0  ;;  %v425_v34 = vpop.eup %424 }
 0x10b   : > { %228 = vadd.xlane.f32.xlu1 %v227_v29  ;;  %v218_v36 = vmul.f32 %v425_v34, %v217_v35 }
 0x17e   : > { %v229_v37 = vpop.xlane.xlu1 %228 }
 0x17f   : > { %v230_v38 = vadd.f32 %v229_v37, %v218_v36 }
 0x181   : > { %232 = vst.msk [vmem:[#allocation3] sm:$0xff] %vm183_vm0, %v230_v38 }
 0x188   : > { %v248_v39 = vld [vmem:[#allocation3] sm:$0xff] }
 0x189   : > { %426 = vlog2.f32 %v248_v39 }
 0x18f   : > { %v427_v40 = vpop.eup %426 }
 0x190   : > { %v250_v41 = vmul.f32 0.6931472, %v427_v40 }
 0x192   : > { %v252_v44 = vadd.f32 %v251_v42, %v250_v41 }
 0x194   : > { %v254_v45 = vsub.f32 %v252_v44, %v253_v43 }
 0x196   : > { %256 = vrot.lane.b32.xlu2 %v254_v45, %s455_s22 }
 0x1f0   : > { %v257_v47 = vpop.permute.xlu2 %256 }
 0x1f1   : > { %v259_v48 = vmul.f32 %v257_v47, %v207_v46 }
 0x1f3   : > { %261 = vrot.lane.b32.xlu2 %v259_v48, %s456_s23 }
 0x1fb   : > { %275 = vrot.lane.b32.xlu2 %v207_v46, %s456_s23 }
 0x24d   : > { %v262_v49 = vpop.permute.xlu2 %261 }
 0x24e   : > { %v264_v50 = vsel %vm183_vm0, %v262_v49, 0.0 }
 0x24f   : > { %265 = vadd.xlane.f32.xlu0 %v264_v50 }
 0x255   : > { %v276_v51 = vpop.permute.xlu2 %275 }
 0x256   : > { %v278_v52 = vsel %vm183_vm0, %v276_v51, 0.0 }
 0x257   : > { %279 = vadd.xlane.f32.xlu2 %v278_v52 }
 0x2c2   : > { %v266_v53 = vpop.xlane.xlu0 %265 }
 0x2c3   : > { %v267_v54 = vrot.slane %v266_v53, 4 }
 0x2c5   : > { %v268_v55 = vadd.f32 %v267_v54, %v266_v53 }
 0x2c7   : > { %v269_v56 = vrot.slane %v268_v55, 2 }
 0x2c9   : > { %v270_v57 = vadd.f32 %v269_v56, %v268_v55 }
 0x2ca   : > { %v280_v58 = vpop.xlane.xlu2 %279 }
 0x2cb   : > { %v281_v59 = vrot.slane %v280_v58, 4  ;;  %v271_v60 = vrot.slane %v270_v57, 1 }
 0x2cd   : > { %v282_v61 = vadd.f32 %v281_v59, %v280_v58  ;;  %v272_v62 = vadd.f32 %v271_v60, %v270_v57 }
 0x2cf   : > { %v283_v63 = vrot.slane %v282_v61, 2  ;;  %387 = vpush %v272_v62 }
 0x2d1   : > { %v284_v0 = vadd.f32 %v283_v63, %v282_v61 }
 0x2d3   : > { %v285_v1 = vrot.slane %v284_v0, 1 }
 0x2d5   : > { %v286_v2 = vadd.f32 %v285_v1, %v284_v0 }
 0x2d7   : > { %389 = vpush %v286_v2 }
 0x300   : > { %s388_s24 = spop %387 }
 0x301   : > { %v292_v5 = vstv %s388_s24 }
 0x308   : > { %s390_s25 = spop %389 }
 0x309   : > { %v290_v4 = vstv %s390_s25 }
 0x30a   : > { %v291_v6 = vsel %vm289_vm6, %v290_v4, 0.0 }
 0x30b   : > { %v293_v7 = vsel %vm288_vm7, %v292_v5, %v291_v6 }
 0x30c   : > { %294 = vst [vmem:[%s178_s28] sm:$0xff] %v293_v7 }
 0x30d PF: > { %s12_s11 = sadd.s32 1, %s450_s11   ;;  %s542_s9 = smov %s446_s10 }
 0x30e   : > { %p9_p5 = scmp.ge.s32.totalorder %s12_s11, 4   ;;  %s543_s10 = smov %s545_s12 }
 0x310   :  { %11 = sbr.rel (!%p9_p5) target bundleno = 2 (0x2), region = 69 }

</bundles_post_ra>
